<compile_context>
chip_gen: v7x
topology: tpu7x:2x2x1
jax: 0.10.0
libtpu: 0.0.40
codegen_flags: <defaults>
</compile_context>

<pallas_src>
import math
import numpy as np
import jax
import jax.numpy as jnp
from jax.experimental import pallas as pl
from jax.experimental.pallas import tpu as pltpu

# ----------------------------- synthetic config -----------------------------
ORIG_SR = 32000      # config.orig_sample_rate
SR = 16000           # config.sample_rate
N_FFT = 64           # config.n_fft
WIN_LEN = 64         # config.window_length
HOP = 16             # config.hop_length
N_MELS = 8           # config.n_mels
F_MIN = 0.0          # config.f_min
F_MAX = 8000.0       # config.f_max
LOWPASS_WIDTH = 6    # torchaudio Resample default
ROLLOFF = 0.99       # torchaudio Resample default

DFT_LANES = 128      # merged (cos | sin) operator width == one full lane group


# --------------------- parameter construction (plain numpy glue) ---------------------
def _sinc_resample_kernel(orig_freq, new_freq,
                          lowpass_filter_width=LOWPASS_WIDTH, rolloff=ROLLOFF):
    """Mirror of torchaudio.functional._get_sinc_resample_kernel (sinc_interp_hann)."""
    gcd = math.gcd(orig_freq, new_freq)
    of = orig_freq // gcd
    nf = new_freq // gcd
    base_freq = min(of, nf) * rolloff
    width = int(math.ceil(lowpass_filter_width * of / base_freq))
    idx = np.arange(-width, width + of, dtype=np.float64)[None, :] / of
    t = np.arange(0, -nf, -1, dtype=np.float64)[:, None] / nf + idx
    t = t * base_freq
    t = np.clip(t, -lowpass_filter_width, lowpass_filter_width)
    window = np.cos(t * math.pi / lowpass_filter_width / 2.0) ** 2
    t = t * math.pi
    scale = base_freq / of
    safe_t = np.where(t == 0.0, 1.0, t)
    kern = np.where(t == 0.0, 1.0, np.sin(safe_t) / safe_t)
    kern = kern * window * scale
    return kern.astype(np.float32), width, of, nf  # kern: (nf, kernel_width)


def _melscale_fbanks(n_freqs, f_min, f_max, n_mels, sample_rate):
    """Mirror of torchaudio.functional.melscale_fbanks (mel_scale='htk', norm=None)."""
    all_freqs = np.linspace(0.0, sample_rate // 2, n_freqs)
    hz_to_mel = lambda f: 2595.0 * np.log10(1.0 + f / 700.0)
    mel_to_hz = lambda m: 700.0 * (10.0 ** (m / 2595.0) - 1.0)
    m_pts = np.linspace(hz_to_mel(f_min), hz_to_mel(f_max), n_mels + 2)
    f_pts = mel_to_hz(m_pts)
    f_diff = f_pts[1:] - f_pts[:-1]
    slopes = f_pts[None, :] - all_freqs[:, None]           # (n_freqs, n_mels + 2)
    down = (-1.0 * slopes[:, :-2]) / f_diff[:-1]
    up = slopes[:, 2:] / f_diff[1:]
    fb = np.maximum(0.0, np.minimum(down, up))
    return fb.astype(np.float32)                            # (n_freqs, n_mels)


def _build_constants():
    """All static operators, laid out for the fused kernel (time/frames on lanes)."""
    kern, width, of, nf = _sinc_resample_kernel(ORIG_SR, SR)
    assert nf == 1, "TODO(synk): only integer decimation (nf == 1) supported in the fused kernel"
    k = kern[0]
    kw = k.shape[0]
    W = of * HOP                                  # input samples consumed per row of HOP outputs
    assert of * (HOP - 1) + kw <= 2 * W, "sinc kernel must span at most two input rows"

    # ---- resample as two banded-Toeplitz blocks: rm[:, p] = RT0 @ xrow[p] + RT1 @ xrow[p+1]
    rt = np.zeros((2, HOP, W), np.float32)
    for d in range(HOP):
        for j in range(kw):
            s = of * d + j
            if s < W:
                rt[0, d, s] = k[j]
            else:
                rt[1, d, s - W] = k[j]

    # ---- reflect-pad boundary columns as constant permutation (reversal) matrices
    assert N_FFT == 4 * HOP, "fused framing assumes n_fft//2 == 2*hop (2 boundary columns per side)"
    refl = np.zeros((4, HOP, HOP), np.float32)
    for d in range(1, HOP):
        refl[0, d, HOP - d] = 1.0                 # A: padded_left[d]  <- res[.. - d] (d >= 1)
    refl[1, 0, 0] = 1.0                           # B: padded_left[0]
    for d in range(HOP - 1):
        refl[2, d, HOP - 2 - d] = 1.0             # C: padded_right[d] <- res[.. - d] (d <= HOP-2)
    refl[3, HOP - 1, HOP - 1] = 1.0               # D: padded_right[HOP-1]

    # ---- windowed DFT: hann folded in, cos|sin merged into one 128-lane operator,
    #      chunked by hop for the in-kernel framing: WD[c] = wdft[c*HOP:(c+1)*HOP, :].T
    assert WIN_LEN == N_FFT, "TODO(synk): WIN_LEN != N_FFT needs a center-padded window"
    n = np.arange(N_FFT)
    win = 0.5 * (1.0 - np.cos(2.0 * np.pi * n / WIN_LEN))          # periodic hann
    n_freqs = N_FFT // 2 + 1
    half = DFT_LANES // 2
    assert n_freqs <= half
    ang = 2.0 * np.pi * np.outer(n, np.arange(n_freqs)) / N_FFT
    wdft = np.zeros((N_FFT, DFT_LANES), np.float64)
    wdft[:, :n_freqs] = win[:, None] * np.cos(ang)
    wdft[:, half:half + n_freqs] = win[:, None] * np.sin(ang)
    n_chunks = N_FFT // HOP
    wd = np.stack([wdft[c * HOP:(c + 1) * HOP, :].T for c in range(n_chunks)]).astype(np.float32)

    # ---- mel filterbank duplicated over the re/im halves (performs the |.|^2 pair-sum)
    fb = _melscale_fbanks(n_freqs, F_MIN, F_MAX, N_MELS, SR)        # (n_freqs, n_mels)
    fbt = np.zeros((N_MELS, DFT_LANES), np.float32)
    fbt[:, :n_freqs] = fb.T
    fbt[:, half:half + n_freqs] = fb.T

    return rt, refl, wd, fbt, width, of, kw


# ------------------------------- fused Pallas kernel -------------------------------
def _make_fused_kernel(n_rows, n_frames, n_chunks):
    def kernel(x_ref, rt_ref, refl_ref, wd_ref, fbt_ref, o_ref):
        f32 = jnp.float32
        x = x_ref[0]                                                   # (W, rows_padded)

        # ---- sinc resample (decimate by `of`): rm[d, p] = res[HOP*p + d] ----
        rm = (jnp.dot(rt_ref[0], x[:, 0:n_rows], preferred_element_type=f32)
              + jnp.dot(rt_ref[1], x[:, 1:n_rows + 1], preferred_element_type=f32))   # (HOP, n_rows)

        # ---- center reflect pad (n_fft//2 = 2*HOP samples each side), via reversal matmuls ----
        ra, rb, rc, rd = refl_ref[0], refl_ref[1], refl_ref[2], refl_ref[3]
        c0 = (jnp.dot(ra, rm[:, 1:2], preferred_element_type=f32)
              + jnp.dot(rb, rm[:, 2:3], preferred_element_type=f32))
        c1 = (jnp.dot(ra, rm[:, 0:1], preferred_element_type=f32)
              + jnp.dot(rb, rm[:, 1:2], preferred_element_type=f32))
        cr0 = (jnp.dot(rc, rm[:, n_rows - 1:n_rows], preferred_element_type=f32)
               + jnp.dot(rd, rm[:, n_rows - 2:n_rows - 1], preferred_element_type=f32))
        cr1 = (jnp.dot(rc, rm[:, n_rows - 2:n_rows - 1], preferred_element_type=f32)
               + jnp.dot(rd, rm[:, n_rows - 3:n_rows - 2], preferred_element_type=f32))
        rp = jnp.concatenate([c0, c1, rm, cr0, cr1], axis=1)           # (HOP, n_rows + 4)

        # ---- framing + windowed DFT: dmat[:, f] = sum_n wdft[n, :] * padded[HOP*f + n] ----
        dmat = jnp.dot(wd_ref[0], rp[:, 0:n_frames], preferred_element_type=f32)   # (128, n_frames)
        for c in range(1, n_chunks):
            dmat = dmat + jnp.dot(wd_ref[c], rp[:, c:c + n_frames],
                                  preferred_element_type=f32)

        # ---- power spectrum, mel projection (pair-sum folded into fbt), log ----
        power = dmat * dmat                                            # (128, n_frames)
        mel = jnp.dot(fbt_ref[...], power, preferred_element_type=f32)  # (n_mels, n_frames)
        o_ref[0] = jnp.log(mel + 1e-5)
    return kernel


# --------------------------------- forward ---------------------------------
def mel_forward(x, sample_rate=None):
    """x: (B, T) float32 waveform at ORIG_SR. Returns (B, n_mels, n_frames) log-mel."""
    del sample_rate  # TODO(synk): constant_freq=False path (per-sample rates) not supported
    B, T = x.shape
    rt, refl, wd, fbt, width, of, kw = _build_constants()

    target_len = int(math.ceil(SR * T / ORIG_SR))
    assert target_len % HOP == 0 and target_len >= N_FFT, "TODO(synk): ragged tails unsupported"
    n_rows = target_len // HOP
    n_frames = 1 + target_len // HOP
    n_chunks = N_FFT // HOP
    W = of * HOP
    rows_padded = ((n_rows + 1 + 7) // 8) * 8
    Lp = rows_padded * W
    assert Lp >= T + 2 * width + of        # covers every sample torch's conv1d would read

    # Host-side glue (tiny, one pass over the 8 KB waveform): zero pad + relayout to
    # (B, W, rows) so every in-kernel access is a contiguous matmul operand.
    x_pad = jnp.pad(x, ((0, 0), (width, Lp - T - width)))
    x_rows = jnp.transpose(x_pad.reshape(B, rows_padded, W), (0, 2, 1))   # (B, W, rows_padded)

    return pl.pallas_call(
        _make_fused_kernel(n_rows, n_frames, n_chunks),
        out_shape=jax.ShapeDtypeStruct((B, N_MELS, n_frames), jnp.float32),
        grid=(B,),
        in_specs=[
            pl.BlockSpec((1, W, rows_padded), lambda b: (b, 0, 0)),
            pl.BlockSpec((2, HOP, W), lambda b: (0, 0, 0)),
            pl.BlockSpec((4, HOP, HOP), lambda b: (0, 0, 0)),
            pl.BlockSpec((n_chunks, DFT_LANES, HOP), lambda b: (0, 0, 0)),
            pl.BlockSpec((N_MELS, DFT_LANES), lambda b: (0, 0)),
        ],
        out_specs=pl.BlockSpec((1, N_MELS, n_frames), lambda b: (b, 0, 0)),
        compiler_params=pltpu.CompilerParams(dimension_semantics=("parallel",)),
    )(x_rows, jnp.asarray(rt), jnp.asarray(refl), jnp.asarray(wd), jnp.asarray(fbt))


# ------------------------- plain-jnp reference (validation only) -------------------------
def _reference_logmel(x):
    """Straightforward mirror of torchaudio Resample -> MelSpectrogram -> log."""
    B, T = x.shape
    kern, width, of, nf = _sinc_resample_kernel(ORIG_SR, SR)
    kw = kern.shape[1]
    hi = jax.lax.Precision.HIGHEST
    xp = jnp.pad(x, ((0, 0), (width, width + of)))
    steps = (xp.shape[1] - kw) // of + 1
    ridx = np.arange(steps)[:, None] * of + np.arange(kw)[None, :]
    res = jnp.einsum("bsk,k->bs", xp[:, ridx], jnp.asarray(kern[0]), precision=hi)
    res = res[:, :int(math.ceil(SR * T / ORIG_SR))]

    pad = N_FFT // 2
    xr = jnp.pad(res, ((0, 0), (pad, pad)), mode="reflect")
    n_frames = 1 + (xr.shape[1] - N_FFT) // HOP
    sidx = np.arange(n_frames)[:, None] * HOP + np.arange(N_FFT)[None, :]
    frames = xr[:, sidx]

    n = np.arange(N_FFT)
    win = (0.5 * (1.0 - np.cos(2.0 * np.pi * n / WIN_LEN))).astype(np.float32)
    n_freqs = N_FFT // 2 + 1
    ang = 2.0 * np.pi * np.outer(n, np.arange(n_freqs)) / N_FFT
    wf = frames * jnp.asarray(win)[None, None, :]
    re = jnp.einsum("bfn,nq->bfq", wf, jnp.asarray(np.cos(ang).astype(np.float32)), precision=hi)
    im = jnp.einsum("bfn,nq->bfq", wf, jnp.asarray(np.sin(ang).astype(np.float32)), precision=hi)
    power = re * re + im * im
    fb = _melscale_fbanks(n_freqs, F_MIN, F_MAX, N_MELS, SR)
    mel = jnp.einsum("bfq,qm->bfm", power, jnp.asarray(fb), precision=hi)
    return jnp.log(jnp.transpose(mel, (0, 2, 1)) + 1e-5)


if __name__ == "__main__":
    key = jax.random.PRNGKey(0)
    B, T = 2, 2048
    x = jax.random.normal(key, (B, T), dtype=jnp.float32)      # waveform batch at ORIG_SR
    sample_rate = jnp.full((B,), ORIG_SR, dtype=jnp.int32)     # unused in constant_freq path

    out = jax.jit(mel_forward)(x, sample_rate)
    out = jax.block_until_ready(out)

    target_len = int(math.ceil(SR * T / ORIG_SR))
    expected_frames = 1 + target_len // HOP
    assert out.shape == (B, N_MELS, expected_frames), out.shape
    assert bool(jnp.all(jnp.isfinite(out)))

    ref = _reference_logmel(x)
    assert bool(jnp.allclose(out, ref, atol=1e-2, rtol=1e-2))
    print("KERNEL_OK")
</pallas_src>

<mosaic_0001>
module attributes {stable_mosaic.version = 11 : i64} {
  func.func @kernel(%arg0: i32, %arg1: memref<1x32x72xf32, #tpu.memory_space<vmem>>, %arg2: memref<2x16x32xf32, #tpu.memory_space<vmem>>, %arg3: memref<4x16x16xf32, #tpu.memory_space<vmem>>, %arg4: memref<4x128x16xf32, #tpu.memory_space<vmem>>, %arg5: memref<8x128xf32, #tpu.memory_space<vmem>>, %arg6: memref<1x8x65xf32, #tpu.memory_space<vmem>>) attributes {dimension_semantics = [#tpu.dimension_semantics<parallel>], iteration_bounds = array<i64: 2>, scalar_prefetch = 0 : i64, scratch_operands = 0 : i64, tpu.core_type = #tpu.core_type<tc>, window_params = [{transform_indices = @transform_0, window_bounds = array<i64: 1, 32, 72>}, {pipeline_mode = #tpu.pipeline_mode<synchronous>, transform_indices = @transform_1, window_bounds = array<i64: 2, 16, 32>}, {pipeline_mode = #tpu.pipeline_mode<synchronous>, transform_indices = @transform_2, window_bounds = array<i64: 4, 16, 16>}, {pipeline_mode = #tpu.pipeline_mode<synchronous>, transform_indices = @transform_3, window_bounds = array<i64: 4, 128, 16>}, {pipeline_mode = #tpu.pipeline_mode<synchronous>, transform_indices = @transform_4, window_bounds = array<i64: 8, 128>}, {transform_indices = @transform_5, window_bounds = array<i64: 1, 8, 65>}]} {
    %c0 = arith.constant 0 : index
    %c0_0 = arith.constant 0 : index
    %c0_1 = arith.constant 0 : index
    %0 = vector.load %arg1[%c0, %c0_0, %c0_1] : memref<1x32x72xf32, #tpu.memory_space<vmem>>, vector<1x32x72xf32>
    %1 = vector.shape_cast %0 : vector<1x32x72xf32> to vector<32x72xf32>
    %c0_2 = arith.constant 0 : index
    %c0_3 = arith.constant 0 : index
    %c0_4 = arith.constant 0 : index
    %2 = vector.load %arg2[%c0_2, %c0_3, %c0_4] : memref<2x16x32xf32, #tpu.memory_space<vmem>>, vector<1x16x32xf32>
    %3 = vector.shape_cast %2 : vector<1x16x32xf32> to vector<16x32xf32>
    %4 = vector.extract_strided_slice %1 {offsets = [0, 0], sizes = [32, 64], strides = [1, 1]} : vector<32x72xf32> to vector<32x64xf32>
    %cst = arith.constant dense<0.000000e+00> : vector<16x64xf32>
    %5 = tpu.matmul %3, %4, %cst {dimension_numbers = #tpu.dot_dimension_numbers<[1], [0], [0], [1], [0, 0, 1, 1], [], []>} : vector<16x32xf32>, vector<32x64xf32>, vector<16x64xf32> -> vector<16x64xf32>
    %c1 = arith.constant 1 : index
    %c0_5 = arith.constant 0 : index
    %c0_6 = arith.constant 0 : index
    %6 = vector.load %arg2[%c1, %c0_5, %c0_6] : memref<2x16x32xf32, #tpu.memory_space<vmem>>, vector<1x16x32xf32>
    %7 = vector.shape_cast %6 : vector<1x16x32xf32> to vector<16x32xf32>
    %8 = vector.extract_strided_slice %1 {offsets = [0, 1], sizes = [32, 64], strides = [1, 1]} : vector<32x72xf32> to vector<32x64xf32>
    %cst_7 = arith.constant dense<0.000000e+00> : vector<16x64xf32>
    %9 = tpu.matmul %7, %8, %cst_7 {dimension_numbers = #tpu.dot_dimension_numbers<[1], [0], [0], [1], [0, 0, 1, 1], [], []>} : vector<16x32xf32>, vector<32x64xf32>, vector<16x64xf32> -> vector<16x64xf32>
    %10 = arith.addf %5, %9 : vector<16x64xf32>
    %c0_8 = arith.constant 0 : index
    %c0_9 = arith.constant 0 : index
    %c0_10 = arith.constant 0 : index
    %11 = vector.load %arg3[%c0_8, %c0_9, %c0_10] : memref<4x16x16xf32, #tpu.memory_space<vmem>>, vector<1x16x16xf32>
    %12 = vector.shape_cast %11 : vector<1x16x16xf32> to vector<16x16xf32>
    %c1_11 = arith.constant 1 : index
    %c0_12 = arith.constant 0 : index
    %c0_13 = arith.constant 0 : index
    %13 = vector.load %arg3[%c1_11, %c0_12, %c0_13] : memref<4x16x16xf32, #tpu.memory_space<vmem>>, vector<1x16x16xf32>
    %14 = vector.shape_cast %13 : vector<1x16x16xf32> to vector<16x16xf32>
    %c2 = arith.constant 2 : index
    %c0_14 = arith.constant 0 : index
    %c0_15 = arith.constant 0 : index
    %15 = vector.load %arg3[%c2, %c0_14, %c0_15] : memref<4x16x16xf32, #tpu.memory_space<vmem>>, vector<1x16x16xf32>
    %16 = vector.shape_cast %15 : vector<1x16x16xf32> to vector<16x16xf32>
    %c3 = arith.constant 3 : index
    %c0_16 = arith.constant 0 : index
    %c0_17 = arith.constant 0 : index
    %17 = vector.load %arg3[%c3, %c0_16, %c0_17] : memref<4x16x16xf32, #tpu.memory_space<vmem>>, vector<1x16x16xf32>
    %18 = vector.shape_cast %17 : vector<1x16x16xf32> to vector<16x16xf32>
    %19 = vector.extract_strided_slice %10 {offsets = [0, 1], sizes = [16, 1], strides = [1, 1]} : vector<16x64xf32> to vector<16x1xf32>
    %cst_18 = arith.constant dense<0.000000e+00> : vector<16x1xf32>
    %20 = tpu.matmul %12, %19, %cst_18 {dimension_numbers = #tpu.dot_dimension_numbers<[1], [0], [0], [1], [0, 0, 1, 1], [], []>} : vector<16x16xf32>, vector<16x1xf32>, vector<16x1xf32> -> vector<16x1xf32>
    %21 = vector.extract_strided_slice %10 {offsets = [0, 2], sizes = [16, 1], strides = [1, 1]} : vector<16x64xf32> to vector<16x1xf32>
    %cst_19 = arith.constant dense<0.000000e+00> : vector<16x1xf32>
    %22 = tpu.matmul %14, %21, %cst_19 {dimension_numbers = #tpu.dot_dimension_numbers<[1], [0], [0], [1], [0, 0, 1, 1], [], []>} : vector<16x16xf32>, vector<16x1xf32>, vector<16x1xf32> -> vector<16x1xf32>
    %23 = arith.addf %20, %22 : vector<16x1xf32>
    %24 = vector.extract_strided_slice %10 {offsets = [0, 0], sizes = [16, 1], strides = [1, 1]} : vector<16x64xf32> to vector<16x1xf32>
    %cst_20 = arith.constant dense<0.000000e+00> : vector<16x1xf32>
    %25 = tpu.matmul %12, %24, %cst_20 {dimension_numbers = #tpu.dot_dimension_numbers<[1], [0], [0], [1], [0, 0, 1, 1], [], []>} : vector<16x16xf32>, vector<16x1xf32>, vector<16x1xf32> -> vector<16x1xf32>
    %26 = vector.extract_strided_slice %10 {offsets = [0, 1], sizes = [16, 1], strides = [1, 1]} : vector<16x64xf32> to vector<16x1xf32>
    %cst_21 = arith.constant dense<0.000000e+00> : vector<16x1xf32>
    %27 = tpu.matmul %14, %26, %cst_21 {dimension_numbers = #tpu.dot_dimension_numbers<[1], [0], [0], [1], [0, 0, 1, 1], [], []>} : vector<16x16xf32>, vector<16x1xf32>, vector<16x1xf32> -> vector<16x1xf32>
    %28 = arith.addf %25, %27 : vector<16x1xf32>
    %29 = vector.extract_strided_slice %10 {offsets = [0, 63], sizes = [16, 1], strides = [1, 1]} : vector<16x64xf32> to vector<16x1xf32>
    %cst_22 = arith.constant dense<0.000000e+00> : vector<16x1xf32>
    %30 = tpu.matmul %16, %29, %cst_22 {dimension_numbers = #tpu.dot_dimension_numbers<[1], [0], [0], [1], [0, 0, 1, 1], [], []>} : vector<16x16xf32>, vector<16x1xf32>, vector<16x1xf32> -> vector<16x1xf32>
    %31 = vector.extract_strided_slice %10 {offsets = [0, 62], sizes = [16, 1], strides = [1, 1]} : vector<16x64xf32> to vector<16x1xf32>
    %cst_23 = arith.constant dense<0.000000e+00> : vector<16x1xf32>
    %32 = tpu.matmul %18, %31, %cst_23 {dimension_numbers = #tpu.dot_dimension_numbers<[1], [0], [0], [1], [0, 0, 1, 1], [], []>} : vector<16x16xf32>, vector<16x1xf32>, vector<16x1xf32> -> vector<16x1xf32>
    %33 = arith.addf %30, %32 : vector<16x1xf32>
    %34 = vector.extract_strided_slice %10 {offsets = [0, 62], sizes = [16, 1], strides = [1, 1]} : vector<16x64xf32> to vector<16x1xf32>
    %cst_24 = arith.constant dense<0.000000e+00> : vector<16x1xf32>
    %35 = tpu.matmul %16, %34, %cst_24 {dimension_numbers = #tpu.dot_dimension_numbers<[1], [0], [0], [1], [0, 0, 1, 1], [], []>} : vector<16x16xf32>, vector<16x1xf32>, vector<16x1xf32> -> vector<16x1xf32>
    %36 = vector.extract_strided_slice %10 {offsets = [0, 61], sizes = [16, 1], strides = [1, 1]} : vector<16x64xf32> to vector<16x1xf32>
    %cst_25 = arith.constant dense<0.000000e+00> : vector<16x1xf32>
    %37 = tpu.matmul %18, %36, %cst_25 {dimension_numbers = #tpu.dot_dimension_numbers<[1], [0], [0], [1], [0, 0, 1, 1], [], []>} : vector<16x16xf32>, vector<16x1xf32>, vector<16x1xf32> -> vector<16x1xf32>
    %38 = arith.addf %35, %37 : vector<16x1xf32>
    %39 = tpu.concatenate %23, %28, %10, %33, %38 in 1 : vector<16x1xf32>, vector<16x1xf32>, vector<16x64xf32>, vector<16x1xf32>, vector<16x1xf32> -> vector<16x68xf32>
    %c0_26 = arith.constant 0 : index
    %c0_27 = arith.constant 0 : index
    %c0_28 = arith.constant 0 : index
    %40 = vector.load %arg4[%c0_26, %c0_27, %c0_28] : memref<4x128x16xf32, #tpu.memory_space<vmem>>, vector<1x128x16xf32>
    %41 = vector.shape_cast %40 : vector<1x128x16xf32> to vector<128x16xf32>
    %42 = vector.extract_strided_slice %39 {offsets = [0, 0], sizes = [16, 65], strides = [1, 1]} : vector<16x68xf32> to vector<16x65xf32>
    %cst_29 = arith.constant dense<0.000000e+00> : vector<128x65xf32>
    %43 = tpu.matmul %41, %42, %cst_29 {dimension_numbers = #tpu.dot_dimension_numbers<[1], [0], [0], [1], [0, 0, 1, 1], [], []>} : vector<128x16xf32>, vector<16x65xf32>, vector<128x65xf32> -> vector<128x65xf32>
    %c1_30 = arith.constant 1 : index
    %c0_31 = arith.constant 0 : index
    %c0_32 = arith.constant 0 : index
    %44 = vector.load %arg4[%c1_30, %c0_31, %c0_32] : memref<4x128x16xf32, #tpu.memory_space<vmem>>, vector<1x128x16xf32>
    %45 = vector.shape_cast %44 : vector<1x128x16xf32> to vector<128x16xf32>
    %46 = vector.extract_strided_slice %39 {offsets = [0, 1], sizes = [16, 65], strides = [1, 1]} : vector<16x68xf32> to vector<16x65xf32>
    %cst_33 = arith.constant dense<0.000000e+00> : vector<128x65xf32>
    %47 = tpu.matmul %45, %46, %cst_33 {dimension_numbers = #tpu.dot_dimension_numbers<[1], [0], [0], [1], [0, 0, 1, 1], [], []>} : vector<128x16xf32>, vector<16x65xf32>, vector<128x65xf32> -> vector<128x65xf32>
    %48 = arith.addf %43, %47 : vector<128x65xf32>
    %c2_34 = arith.constant 2 : index
    %c0_35 = arith.constant 0 : index
    %c0_36 = arith.constant 0 : index
    %49 = vector.load %arg4[%c2_34, %c0_35, %c0_36] : memref<4x128x16xf32, #tpu.memory_space<vmem>>, vector<1x128x16xf32>
    %50 = vector.shape_cast %49 : vector<1x128x16xf32> to vector<128x16xf32>
    %51 = vector.extract_strided_slice %39 {offsets = [0, 2], sizes = [16, 65], strides = [1, 1]} : vector<16x68xf32> to vector<16x65xf32>
    %cst_37 = arith.constant dense<0.000000e+00> : vector<128x65xf32>
    %52 = tpu.matmul %50, %51, %cst_37 {dimension_numbers = #tpu.dot_dimension_numbers<[1], [0], [0], [1], [0, 0, 1, 1], [], []>} : vector<128x16xf32>, vector<16x65xf32>, vector<128x65xf32> -> vector<128x65xf32>
    %53 = arith.addf %48, %52 : vector<128x65xf32>
    %c3_38 = arith.constant 3 : index
    %c0_39 = arith.constant 0 : index
    %c0_40 = arith.constant 0 : index
    %54 = vector.load %arg4[%c3_38, %c0_39, %c0_40] : memref<4x128x16xf32, #tpu.memory_space<vmem>>, vector<1x128x16xf32>
    %55 = vector.shape_cast %54 : vector<1x128x16xf32> to vector<128x16xf32>
    %56 = vector.extract_strided_slice %39 {offsets = [0, 3], sizes = [16, 65], strides = [1, 1]} : vector<16x68xf32> to vector<16x65xf32>
    %cst_41 = arith.constant dense<0.000000e+00> : vector<128x65xf32>
    %57 = tpu.matmul %55, %56, %cst_41 {dimension_numbers = #tpu.dot_dimension_numbers<[1], [0], [0], [1], [0, 0, 1, 1], [], []>} : vector<128x16xf32>, vector<16x65xf32>, vector<128x65xf32> -> vector<128x65xf32>
    %58 = arith.addf %53, %57 : vector<128x65xf32>
    %59 = arith.mulf %58, %58 : vector<128x65xf32>
    %c0_42 = arith.constant 0 : index
    %c0_43 = arith.constant 0 : index
    %60 = vector.load %arg5[%c0_42, %c0_43] : memref<8x128xf32, #tpu.memory_space<vmem>>, vector<8x128xf32>
    %cst_44 = arith.constant dense<0.000000e+00> : vector<8x65xf32>
    %61 = tpu.matmul %60, %59, %cst_44 {dimension_numbers = #tpu.dot_dimension_numbers<[1], [0], [0], [1], [0, 0, 1, 1], [], []>} : vector<8x128xf32>, vector<128x65xf32>, vector<8x65xf32> -> vector<8x65xf32>
    %cst_45 = arith.constant 9.99999974E-6 : f32
    %62 = vector.broadcast %cst_45 : f32 to vector<8x65xf32>
    %63 = arith.addf %61, %62 : vector<8x65xf32>
    %64 = math.log %63 : vector<8x65xf32>
    %c0_46 = arith.constant 0 : index
    %c0_47 = arith.constant 0 : index
    %c0_48 = arith.constant 0 : index
    %65 = vector.load %arg6[%c0_46, %c0_47, %c0_48] : memref<1x8x65xf32, #tpu.memory_space<vmem>>, vector<1x8x65xf32>
    %66 = vector.shape_cast %65 : vector<1x8x65xf32> to vector<8x65xf32>
    %67 = vector.shape_cast %64 : vector<8x65xf32> to vector<1x8x65xf32>
    tpu.vector_store %arg6[%c0_46, %c0_47, %c0_48], %67 {strides = array<i32>} : memref<1x8x65xf32, #tpu.memory_space<vmem>>, vector<1x8x65xf32>,
    return
  }
  func.func @transform_0(%arg0: i32) -> (i32, i32, i32) {
    %c0_i32 = arith.constant 0 : i32
    %c0_i32_0 = arith.constant 0 : i32
    %c0_i32_1 = arith.constant 0 : i32
    return %arg0, %c0_i32, %c0_i32_0 : i32, i32, i32
  }
  func.func @transform_1(%arg0: i32) -> (i32, i32, i32) {
    %c0_i32 = arith.constant 0 : i32
    %c0_i32_0 = arith.constant 0 : i32
    %c0_i32_1 = arith.constant 0 : i32
    %c0_i32_2 = arith.constant 0 : i32
    return %c0_i32, %c0_i32_0, %c0_i32_1 : i32, i32, i32
  }
  func.func @transform_2(%arg0: i32) -> (i32, i32, i32) {
    %c0_i32 = arith.constant 0 : i32
    %c0_i32_0 = arith.constant 0 : i32
    %c0_i32_1 = arith.constant 0 : i32
    %c0_i32_2 = arith.constant 0 : i32
    return %c0_i32, %c0_i32_0, %c0_i32_1 : i32, i32, i32
  }
  func.func @transform_3(%arg0: i32) -> (i32, i32, i32) {
    %c0_i32 = arith.constant 0 : i32
    %c0_i32_0 = arith.constant 0 : i32
    %c0_i32_1 = arith.constant 0 : i32
    %c0_i32_2 = arith.constant 0 : i32
    return %c0_i32, %c0_i32_0, %c0_i32_1 : i32, i32, i32
  }
  func.func @transform_4(%arg0: i32) -> (i32, i32) {
    %c0_i32 = arith.constant 0 : i32
    %c0_i32_0 = arith.constant 0 : i32
    %c0_i32_1 = arith.constant 0 : i32
    return %c0_i32, %c0_i32_0 : i32, i32
  }
  func.func @transform_5(%arg0: i32) -> (i32, i32, i32) {
    %c0_i32 = arith.constant 0 : i32
    %c0_i32_0 = arith.constant 0 : i32
    %c0_i32_1 = arith.constant 0 : i32
    return %arg0, %c0_i32, %c0_i32_0 : i32, i32, i32
  }
}

</mosaic_0001>

<bundles_post_ra>
// kernel: mel_forward.1
= control target key start
LH: loop header
LB: loop body
LE: loop exit
PB: predicated region body
PF: predicated region fallthrough
CT: control target
= control target key end

     0   :  { %10 = vsyncpa [#allocation3], 0  ;;  %s3369_s0 = inlined_call_operand.vmem [shape: f32[2,32,72], index: 0, kind: input, shape index: {}]   ;;  %s3370_s1 = inlined_call_operand.vmem [shape: f32[2,16,32], index: 1, kind: input, shape index: {}]   ;;  %s3371_s2 = inlined_call_operand.vmem [shape: f32[4,16,16], index: 2, kind: input, shape index: {}]   ;;  %s3372_s3 = inlined_call_operand.hbm [shape: f32[4,128,16], index: 3, kind: input, shape index: {}]   ;;  %s3373_s4 = inlined_call_operand.vmem [shape: f32[8,128], index: 4, kind: input, shape index: {}]   ;;  %s3374_s5 = inlined_call_operand.hbm [shape: f32[2,8,65], index: 5, kind: output, shape index: {}]  }
   0x1   :  { %11 = vsyncpa [#allocation4], 0 }
   0x2   :  { %13 = vsyncpa [#allocation4 + $0x1], 0  ;;  %s3089_s18 = smov 0   ;;  %s3091_s19 = smov 0  }
   0x3   :  { %s3093_s20 = smov 0   ;;  %s3095_s21 = smov 0  }
   0x4 LB: > { %s3110_s22 = sadd.s32 4294967295, %s3042_s21   ;;  %s2203_s23 = sadd.s32 4294967294, %s3042_s21   ;;  %s3042_s21 = sphi %s3095_s21, %s3390_s21   ;;  %s3038_s20 = sphi %s3093_s20, %s3389_s20   ;;  %s3034_s19 = sphi %s3091_s19, %s3388_s19   ;;  %s3030_s18 = sphi %s3089_s18, %s3387_s18  }
   0x5   : > { %s3114_s24 = sadd.s32 1, %s3042_s21   ;;  %s136_s25 = sadd.s32 1, %s3038_s20 }
   0x6   : > { %s133_s26 = ssub.s32 %s3042_s21, %s3114_s24  ;;  %p146_p0 = scmp.ne.s32.totalorder %s3038_s20, %s3034_s19 }
   0x7   : > { %p134_p1 = scmp.eq.s32.totalorder %s133_s26, 0  ;;  %p147_p2 = scmp.eq.s32.totalorder %s3110_s22, 1 }
   0x8   : > { %p152_p3 = scmp.ne.s32.totalorder %s3034_s19, %s3030_s18  ;;  %p153_p4 = scmp.eq.s32.totalorder %s2203_s23, 1 }
   0x9   : > { %s3125_s27 = scalar_select %p134_p1, %s3038_s20, %s136_s25  }
   0xa   : > { %p3127_p5 = por %p147_p2, %p146_p0  ;;  %p3131_p6 = por %p153_p4, %p152_p3 }
   0xb   : > { %p2204_p7 = scmp.ge.s32.totalorder %s3042_s21, 1  ;;  %p160_p8 = scmp.lt.s32.totalorder %s3042_s21, 3 }
   0xc   : > { %s3378_s28 = scalar_select %p3127_p5, 1, 0 }
   0xd   : > { %s3379_s29 = scalar_select %p3131_p6, 1, 0 }
   0xe   : > { %p3375_p9 = scmp.eq.s32.totalorder %s3110_s22, 0  ;;  %p3138_p10 = pnand %p2204_p7, %p160_p8 }
   0xf   : > { %s3044_s6 = smov [#allocation2]   ;;  %s2948_s11 = scalar_lea.hbm %s3372_s3, 8192 }
  0x10   : > { %s3380_s30 = scalar_select %p3138_p10, 1, 0 }
  0x11   : > { %s178_s7 = sshll.u32 %s3044_s6, 4  ;;  %p2819_p11 = pneg %p3138_p10  ;;  %s179_s7 = int_to_ptr.vmem [resolvable:$true] %s178_s7 }
  0x12   : > { %p2949_p13 = scmp.ne.s32.totalorder %s3372_s3, %s2948_s11  ;;  %p2955_p3 = scmp.lt.u32.totalorder %s2948_s11, %s3372_s3 }
  0x13   : > { %p3146_p12 = pnand %p3375_p9, %p2819_p11 }
  0x15   : > { %p2950_p0 = pneg %p3146_p12 }
  0x17   : > { %p2951_p1 = pnand %p2950_p0, %p2949_p13 }
  0x19   : > { %p2952_p2 = pneg %p2951_p1 }
  0x1b   : > { %p2957_p4 = pnand %p2955_p3, %p2952_p2 }
  0x1d   : > { %2960 = shalt.err (!%p2957_p4)
}
  0x1e   : > { %s2961_s16 = scalar_lea.vmem %s179_s7, 8192  ;;  %p2969_p9 = scmp.lt.s32.totalorder %s179_s7, %s179_s7 }
  0x1f   : > { %p2962_p7 = scmp.ne.s32.totalorder %s179_s7, %s2961_s16  ;;  %p2970_p6 = scmp.lt.s32.totalorder %s2961_s16, %s2961_s16 }
  0x21   : > { %p2964_p8 = pnand %p2962_p7, %p2950_p0  ;;  %p2971_p5 = por %p2970_p6, %p2969_p9 }
  0x23   : > { %p2965_p11 = pneg %p2964_p8 }
  0x25   : > { %p2972_p10 = pnand %p2971_p5, %p2965_p11 }
  0x27   : > { %2975 = shalt.err (!%p2972_p10)
}
  0x28   : > { %s3045_s17 = smov 128   ;;  %s3046_s23 = smov 8  }
  0x29   : > { %2822 = dma.hbm_to_vmem [thread:$0]  (!%p3146_p12), %s3372_s3, 8192, %s179_s7, [#allocation3], %s3045_s17, %s3045_s17, %s3046_s23  }
  0x2a   : > { %p3382_p13 = scmp.ne.s32.totalorder %s3380_s30, 0 }
  0x2b   : > { %p3383_p1 = scmp.eq.s32.totalorder (!%p3382_p13), %s3110_s22, 0 }
  0x2c   : > { %205 = sbr.rel (%p3382_p13) target bundleno = 1547 (0x60b), region = 40 }
  0x33   : > { %3021 = dma.done.wait (%p3383_p1), [#allocation3], 8192   ;;  %p3384_p0 = pmov %p3383_p1 }
  0x34   : > { %p233_p5 = scmp.lt.s32.totalorder %s3110_s22, 1  ;;  %vm263_vm0 = vcmask 261120   ;;  %v2212_v6 = vld [vmem:[%s3370_s1 + $0x10] sm:$0xff]  ;;  %s3047_s12 = smov 127   ;;  %v2213_v17 = vld [vmem:[%s3370_s1 + $0x18] sm:$0xff]  ;;  %v242_v18 = vld [vmem:[%s3370_s1] sm:$0xff] }
  0x35   : > { %3023 = vsyncadd (%p3384_p0), [#allocation3], 4294959104  ;;  %2450 = vmatprep.mubr.msk.f32.mxu0 %vm263_vm0, %v2212_v6  ;;  %v243_v19 = vld [vmem:[%s3370_s1 + $0x8] sm:$0xff]  ;;  %v2218_v20 = vld [vmem:[%s3371_s2 + $0x10] sm:$0xff]  ;;  %vm445_vm1 = vcmask 130048   ;;  %s3048_s10 = smov 66  }
  0x36   : > { %s234_s6 = scalar_select %p233_p5, %s3110_s22, 1  ;;  %2468 = vmatprep.mubr.msk.f32.mxu1 %vm445_vm1, %v2218_v20  ;;  %v3202_v21 = vld [vmem:[%s3371_s2 + $0x30] sm:$0xff]  ;;  %v2219_v40 = vld [vmem:[%s3371_s2 + $0x18] sm:$0xff]  ;;  %v426_v44 = vld [vmem:[%s3371_s2] sm:$0xff]  ;;  %vm1124_vm2 = vcmask 7168   ;;  %vm1127_vm3 = vcmask 15360  }
  0x37   : > { %s3049_s8 = smov 126   ;;  %s3051_s30 = smov 2   ;;  %v2223_v43 = vld [vmem:[%s3371_s2 + $0x38] sm:$0xff]  ;;  %v2220_v45 = vld [vmem:[%s3371_s2 + $0x20] sm:$0xff]  ;;  %v427_v47 = vld [vmem:[%s3371_s2 + $0x8] sm:$0xff]  ;;  %vm1130_vm4 = vcmask 539648  }
  0x38   : > { %s2308_s9 = sshll.u32 %s234_s6, 5  ;;  %s3052_s7 = smov 67   ;;  %v2221_v48 = vld [vmem:[%s3371_s2 + $0x28] sm:$0xff]  ;;  %vm1133_vm5 = vcmask 547840   ;;  %vm3056_vm6 = vmmov 0   ;;  %vm2116_vm7 = vcmask 531456  }
  0x39   : > { %s237_s11 = scalar_lea.vmem %s3369_s0, %s2308_s9  ;;  %s3053_s13 = smov 1  }
  0x3a   : > { %v238_v0 = vld [vmem:[%s237_s11] sm:$0xff]  ;;  %v239_v1 = vld [vmem:[%s237_s11 + $0x8] sm:$0xff]  ;;  %v240_v2 = vld [vmem:[%s237_s11 + $0x10] sm:$0xff]  ;;  %s2305_s15 = sshll.u32 %s3110_s22, 7  ;;  %p3385_p9 = scmp.ne.s32.totalorder %s3378_s28, 0 }
  0x3b   : > { %v2876_v3 = vpack.i.bf16 %v239_v1, %v238_v0  ;;  %v2675_v4 = vpack.c.bf16 %v239_v1, %v238_v0  ;;  %v241_v5 = vld [vmem:[%s237_s11 + $0x18] sm:$0xff]  ;;  %s3050_s11 = smov 65   ;;  %s3327_s26 = scalar_lea.hbm %s3374_s5, %s2305_s15 }
  0x3c   : > { %v2881_v7 = vpack.i.bf16 %v241_v5, %v240_v2  ;;  %v2679_v8 = vpack.c.bf16 %v241_v5, %v240_v2  ;;  %s3058_s22 = smov [#allocation5]  }
  0x3d   : > { %2877 = vrot.lane.b32.xlu0 %v2876_v3, %s3047_s12 }
  0x41   : > { %2882 = vrot.lane.b32.xlu0 %v2881_v7, %s3047_s12 }
  0xaf   : > { %v2878_v9 = vpop.permute.xlu0 %2877 }
  0xb0   : > { %v2880_v10 = vunpack.i.h.bf16 %v2878_v9  ;;  %v2879_v11 = vunpack.i.l.bf16 %v2878_v9 }
  0xb2   : > { %v2667_v12 = vpack.c.bf16 %v2880_v10, %v2879_v11  ;;  %v1153_v10 = vld [vmem:[#allocation2 + $0x80] sm:$0xff] }
  0xb3   : > { %v2883_v13 = vpop.permute.xlu0 %2882  ;;  %v1564_v11 = vld [vmem:[#allocation2 + $0x100] sm:$0xff] }
  0xb4   : > { %v2885_v14 = vunpack.i.h.bf16 %v2883_v13  ;;  %v2884_v15 = vunpack.i.l.bf16 %v2883_v13  ;;  %2668 = vmatprep.subr.bf16.mxu0 %v2667_v12 }
  0xb5   : > { %2670 = vmatpush3.bf16.msra.mxu0 %v2667_v12 }
  0xb6   : > { %v2671_v16 = vpack.c.bf16 %v2885_v14, %v2884_v15 }
  0xb8   : > { %2672 = vmatprep.subr.bf16.mxu0 %v2671_v16 }
  0xb9   : > { %2674 = vmatpush3.bf16.msra.mxu0 %v2671_v16 }
  0xba   : > { %2676 = vmatprep.subr.bf16.mxu0 %v2675_v4 }
  0xbc   : > { %2451 = vmatmul.mubr.msk.f32.vlgmr.msra.gmra.mrb[0].mxu0 %vm263_vm0, %v2213_v17 }
  0xbd   : > { %2678 = vmatpush3.bf16.msra.mxu0 %v2675_v4  ;;  %2461 = vmatprep.mubr.msk.f32.mxu0 %vm263_vm0, %v242_v18 }
  0xbe   : > { %2680 = vmatprep.subr.bf16.mxu0 %v2679_v8 }
  0xc1   : > { %2682 = vmatpush3.bf16.msra.mxu0 %v2679_v8 }
  0xc4   : > { %2462 = vmatmul.mubr.msk.f32.vlgmr.msra.gmra.mrb[0].mxu0 %vm263_vm0, %v243_v19 }
  0xc5   : > { %2496 = vmatprep.mubr.msk.f32.mxu0 %vm445_vm1, %v3202_v21 }
 0x197   : > { %v2463_v22 = vpop.f32.mrb[0].mxu0 }
 0x198   : > { %v417_v23 = vpop.f32.mrb[1].mxu0 }
 0x199   : > { %v2896_v24 = vpack.i.bf16 %v2463_v22, %v417_v23  ;;  %v2695_v25 = vpack.c.bf16 %v2463_v22, %v417_v23 }
 0x19b   : > { %2897 = vrot.lane.b32.xlu0 %v2896_v24, %s3048_s10  ;;  %2887 = vrot.lane.b32.xlu1 %v2896_v24, %s3049_s8 }
 0x19f   : > { %2907 = vrot.lane.b32.xlu0 %v2896_v24, %s3050_s11  ;;  %2892 = vrot.lane.b32.xlu1 %v2896_v24, %s3047_s12  ;;  %s2980_s11 = sshll.u32 %s3058_s22, 4  ;;  %s2981_s11 = int_to_ptr.vmem [resolvable:$false] %s2980_s11 }
 0x1a3   : > { %2912 = vrot.lane.b32.xlu0 %v2896_v24, %s3051_s30  ;;  %2902 = vrot.lane.b32.xlu1 %v2896_v24, %s3052_s7  ;;  %s2982_s30 = scalar_lea.vmem %s2981_s11, 256 }
 0x20d   : > { %v2898_v26 = vpop.permute.xlu0 %2897  ;;  %v2888_v27 = vpop.permute.xlu1 %2887 }
 0x20e   : > { %v2900_v28 = vunpack.i.h.bf16 %v2898_v26  ;;  %v2899_v29 = vunpack.i.l.bf16 %v2898_v26  ;;  %v2890_v30 = vunpack.i.h.bf16 %v2888_v27  ;;  %v2889_v31 = vunpack.i.l.bf16 %v2888_v27 }
 0x210   : > { %v2699_v32 = vpack.c.bf16 %v2900_v28, %v2899_v29  ;;  %v2683_v33 = vpack.c.bf16 %v2890_v30, %v2889_v31 }
 0x211   : > { %v2908_v34 = vpop.permute.xlu0 %2907  ;;  %v2893_v35 = vpop.permute.xlu1 %2892 }
 0x212   : > { %v2910_v36 = vunpack.i.h.bf16 %v2908_v34  ;;  %v2909_v37 = vunpack.i.l.bf16 %v2908_v34  ;;  %v2895_v38 = vunpack.i.h.bf16 %v2893_v35  ;;  %v2894_v39 = vunpack.i.l.bf16 %v2893_v35  ;;  %2684 = vmatprep.subr.bf16.mxu1 %v2683_v33  ;;  %2700 = vmatprep.subr.bf16.mxu0 %v2699_v32  ;;  %v1154_v34 = vld [vmem:[#allocation2 + $0x88] sm:$0xff] }
 0x213   : > { %2686 = vmatpush3.bf16.msra.mxu1 %v2683_v33  ;;  %2702 = vmatpush3.bf16.msra.mxu0 %v2699_v32  ;;  %v1565_v35 = vld [vmem:[#allocation2 + $0x108] sm:$0xff] }
 0x214   : > { %v2703_v41 = vpack.c.bf16 %v2910_v36, %v2909_v37  ;;  %v2687_v42 = vpack.c.bf16 %v2895_v38, %v2894_v39  ;;  %v1155_v37 = vld [vmem:[#allocation2 + $0x90] sm:$0xff]  ;;  %v1156_v39 = vld [vmem:[#allocation2 + $0x98] sm:$0xff] }
 0x215   : > { %v2903_v46 = vpop.permute.xlu1 %2902  ;;  %v2913_v3 = vpop.permute.xlu0 %2912  ;;  %v1566_v38 = vld [vmem:[#allocation2 + $0x110] sm:$0xff] }
 0x216   : > { %2469 = vmatmul.mubr.msk.f32.vlgmr.msra.gmra.mrb[0].mxu1 %vm445_vm1, %v2219_v40  ;;  %2688 = vmatprep.subr.bf16.mxu1 %v2687_v42  ;;  %v2905_v49 = vunpack.i.h.bf16 %v2903_v46  ;;  %v2904_v50 = vunpack.i.l.bf16 %v2903_v46  ;;  %v2915_v8 = vunpack.i.h.bf16 %v2913_v3  ;;  %v2914_v9 = vunpack.i.l.bf16 %v2913_v3  ;;  %v1570_v46 = vld [vmem:[#allocation2 + $0x130] sm:$0xff]  ;;  %v1137_v3 = vld [vmem:[#allocation2 + $0x8] sm:$0xff] }
 0x217   : > { %2704 = vmatprep.subr.bf16.mxu0 %v2703_v41  ;;  %2690 = vmatpush3.bf16.msra.mxu1 %v2687_v42 }
 0x218   : > { %2497 = vmatmul.mubr.msk.f32.vlgmr.msra.gmra.mrb[2].mxu0 %vm445_vm1, %v2223_v43  ;;  %2692 = vmatprep.subr.bf16.mxu1 %v2687_v42  ;;  %v2707_v51 = vpack.c.bf16 %v2905_v49, %v2904_v50  ;;  %v1161_v49 = vld [vmem:[#allocation2 + $0xc0] sm:$0xff] }
 0x219   : > { %2706 = vmatpush3.bf16.msra.mxu0 %v2703_v41  ;;  %2475 = vmatprep.mubr.msk.f32.mxu1 %vm445_vm1, %v426_v44  ;;  %v1157_v41 = vld [vmem:[#allocation2 + $0xa0] sm:$0xff] }
 0x21a   : > { %2503 = vmatprep.mubr.msk.f32.mxu0 %vm445_vm1, %v2220_v45  ;;  %v1572_v50 = vld [vmem:[#allocation2 + $0x140] sm:$0xff] }
 0x21e   : > { %2476 = vmatmul.mubr.msk.f32.vlgmr.msra.gmra.mrb[0].mxu1 %vm445_vm1, %v427_v47 }
 0x21f   : > { %2694 = vmatpush3.bf16.msra.mxu1 %v2687_v42  ;;  %2482 = vmatprep.mubr.msk.f32.mxu1 %vm445_vm1, %v2218_v20  ;;  %v1568_v42 = vld [vmem:[#allocation2 + $0x120] sm:$0xff] }
 0x220   : > { %2696 = vmatprep.subr.bf16.mxu1 %v2695_v25  ;;  %2504 = vmatmul.mubr.msk.f32.vlgmr.msra.gmra.mrb[2].mxu0 %vm445_vm1, %v2221_v48 }
 0x221   : > { %2580 = vmatprep.mubr.msk.f32.mxu0 %vm445_vm1, %v1564_v11  ;;  %v1141_v11 = vld [vmem:[#allocation2 + $0x28] sm:$0xff] }
 0x222   : > { %2483 = vmatmul.mubr.msk.f32.vlgmr.msra.gmra.mrb[2].mxu1 %vm445_vm1, %v2219_v40  ;;  %v1567_v40 = vld [vmem:[#allocation2 + $0x118] sm:$0xff] }
 0x223   : > { %2698 = vmatpush3.bf16.msra.mxu1 %v2695_v25  ;;  %2489 = vmatprep.mubr.msk.f32.mxu1 %vm445_vm1, %v426_v44  ;;  %v1569_v44 = vld [vmem:[#allocation2 + $0x128] sm:$0xff] }
 0x224   : > { %2708 = vmatprep.subr.bf16.mxu1 %v2707_v51 }
 0x22a   : > { %2490 = vmatmul.mubr.msk.f32.vlgmr.msra.gmra.mrb[2].mxu1 %vm445_vm1, %v427_v47  ;;  %v1160_v47 = vld [vmem:[#allocation2 + $0xb8] sm:$0xff] }
 0x22b   : > { %2710 = vmatpush3.bf16.msra.mxu1 %v2707_v51  ;;  %2510 = vmatprep.mubr.msk.f32.mxu1 %vm445_vm1, %v3202_v21  ;;  %v1162_v51 = vld [vmem:[#allocation2 + $0xc8] sm:$0xff] }
 0x22c   : > { %2712 = vmatprep.subr.bf16.mxu1 %v2699_v32 }
 0x22e   : > { %2511 = vmatmul.mubr.msk.f32.vlgmr.msra.gmra.mrb[4].mxu1 %vm445_vm1, %v2223_v43  ;;  %v1158_v43 = vld [vmem:[#allocation2 + $0xa8] sm:$0xff] }
 0x22f   : > { %2714 = vmatpush3.bf16.msra.mxu1 %v2699_v32  ;;  %2517 = vmatprep.mubr.msk.f32.mxu1 %vm445_vm1, %v2220_v45  ;;  %v1159_v45 = vld [vmem:[#allocation2 + $0xb0] sm:$0xff] }
 0x236   : > { %2518 = vmatmul.mubr.msk.f32.vlgmr.msra.gmra.mrb[4].mxu1 %vm445_vm1, %v2221_v48  ;;  %v1571_v48 = vld [vmem:[#allocation2 + $0x138] sm:$0xff] }
 0x237   : > { %2524 = vmatprep.mubr.msk.f32.mxu1 %vm445_vm1, %v1153_v10  ;;  %v1800_v10 = vld [vmem:[#allocation2 + $0x1a0] sm:$0xff] }
 0x2f1   : > { %v2477_v52 = vpop.f32.mrb[0].mxu1 }
 0x2f2   : > { %v605_v53 = vpop.f32.mrb[1].mxu1 }
 0x2f3   : > { %v2505_v54 = vpop.f32.mrb[2].mxu0 }
 0x2f4   : > { %v929_v55 = vpop.f32.mrb[3].mxu0 }
 0x2f5   : > { %v2921_v56 = vpack.i.bf16 %v2505_v54, %v929_v55  ;;  %v1574_v54 = vld [vmem:[#allocation2 + $0x150] sm:$0xff]  ;;  %v1164_v55 = vld [vmem:[#allocation2 + $0xd8] sm:$0xff] }
 0x2fd   : > { %v2491_v57 = vpop.f32.mrb[2].mxu1 }
 0x2fe   : > { %v755_v58 = vpop.f32.mrb[3].mxu1 }
 0x2ff   : > { %v2916_v59 = vpack.i.bf16 %v2491_v57, %v755_v58  ;;  %v1165_v57 = vld [vmem:[#allocation2 + $0xe0] sm:$0xff] }
 0x300   : > { %v1576_v58 = vld [vmem:[#allocation2 + $0x160] sm:$0xff] }
 0x301   : > { %2917 = vrot.lane.b32.xlu1 %v2916_v59, %s3053_s13  ;;  %v1166_v59 = vld [vmem:[#allocation2 + $0xe8] sm:$0xff] }
 0x305   : > { %2922 = vrot.lane.b32.xlu1 %v2921_v56, %s3048_s10  ;;  %s3054_s10 = smov 125   ;;  %v1575_v56 = vld [vmem:[#allocation2 + $0x158] sm:$0xff] }
 0x309   : > { %v2519_v60 = vpop.f32.mrb[4].mxu1 }
 0x30a   : > { %v1085_v61 = vpop.f32.mrb[5].mxu1 }
 0x30b   : > { %v2926_v62 = vpack.i.bf16 %v2519_v60, %v1085_v61  ;;  %v1577_v60 = vld [vmem:[#allocation2 + $0x168] sm:$0xff]  ;;  %v1167_v61 = vld [vmem:[#allocation2 + $0xf0] sm:$0xff] }
 0x30d   : > { %2927 = vrot.lane.b32.xlu0 %v2926_v62, %s3052_s7  ;;  %v1578_v62 = vld [vmem:[#allocation2 + $0x170] sm:$0xff]  ;;  %s230_s7 = sand.u32 1, %s3034_s19  }
 0x30e   : > { %s2209_s14 = sshll.u32 %s230_s7, 3  ;;  %s2119_s6 = scalar_lea.sflag [#allocation4], %s230_s7 }
 0x30f   : > { %s232_s16 = scalar_lea.vmem [#allocation5], %s2209_s14 }
 0x310   : > { %s2132_s17 = sshll.u32 %s232_s16, 4  ;;  %s3329_s17 = int_to_ptr.vmem [resolvable:$true] %s2132_s17 }
 0x311   : > { %s2976_s9 = scalar_lea.vmem %s3329_s17, 128  ;;  %p2983_p2 = scmp.lt.s32.totalorder %s3329_s17, %s2981_s11 }
 0x312   : > { %p2977_p6 = scmp.ne.s32.totalorder %s3329_s17, %s2976_s9  ;;  %p2984_p3 = scmp.lt.s32.totalorder %s2982_s30, %s2976_s9 }
 0x314   : > { %p2978_p10 = pnand %p2977_p6, %p3385_p9  ;;  %p2985_p4 = por %p2984_p3, %p2983_p2 }
 0x316   : > { %p2979_p12 = pneg %p2978_p10 }
 0x318   : > { %p2986_p7 = pnand %p2985_p4, %p2979_p12 }
 0x373   : > { %v2918_v63 = vpop.permute.xlu1 %2917 }
 0x374   : > { %v2920_v0 = vunpack.i.h.bf16 %v2918_v63  ;;  %v2919_v1 = vunpack.i.l.bf16 %v2918_v63  ;;  %v1168_v63 = vld [vmem:[#allocation2 + $0xf8] sm:$0xff] }
 0x376   : > { %v1126_v4 = vsel %vm1124_vm2, %v2477_v52, %v2920_v0  ;;  %v1125_v5 = vsel %vm1124_vm2, %v605_v53, %v2919_v1  ;;  %v1573_v52 = vld [vmem:[#allocation2 + $0x148] sm:$0xff]  ;;  %v1163_v53 = vld [vmem:[#allocation2 + $0xd0] sm:$0xff]  ;;  %v1579_v0 = vld [vmem:[#allocation2 + $0x178] sm:$0xff] }
 0x377   : > { %v2923_v2 = vpop.permute.xlu1 %2922  ;;  %v1128_v13 = vsel %vm1127_vm3, %v1125_v5, %v2914_v9  ;;  %v1129_v14 = vsel %vm1127_vm3, %v1126_v4, %v2915_v8  ;;  %v1136_v1 = vld [vmem:[#allocation2] sm:$0xff]  ;;  %v1797_v4 = vld [vmem:[#allocation2 + $0x188] sm:$0xff]  ;;  %v1138_v5 = vld [vmem:[#allocation2 + $0x10] sm:$0xff] }
 0x378   : > { %v2925_v6 = vunpack.i.h.bf16 %v2923_v2  ;;  %v2924_v7 = vunpack.i.l.bf16 %v2923_v2  ;;  %v1796_v2 = vld [vmem:[#allocation2 + $0x180] sm:$0xff]  ;;  %v1799_v8 = vld [vmem:[#allocation2 + $0x198] sm:$0xff] }
 0x379   : > { %v1140_v9 = vld [vmem:[#allocation2 + $0x20] sm:$0xff] }
 0x37a   : > { %v1131_v17 = vsel %vm1130_vm4, %v1128_v13, %v2924_v7  ;;  %v1132_v18 = vsel %vm1130_vm4, %v1129_v14, %v2925_v6  ;;  %v1798_v6 = vld [vmem:[#allocation2 + $0x190] sm:$0xff]  ;;  %v1139_v7 = vld [vmem:[#allocation2 + $0x18] sm:$0xff] }
 0x37b   : > { %v1142_v13 = vld [vmem:[#allocation2 + $0x30] sm:$0xff] }
 0x37c   : > { %v1802_v14 = vld [vmem:[#allocation2 + $0x1b0] sm:$0xff] }
 0x37f   : > { %v2928_v12 = vpop.permute.xlu0 %2927 }
 0x380   : > { %v2930_v15 = vunpack.i.h.bf16 %v2928_v12  ;;  %v2929_v16 = vunpack.i.l.bf16 %v2928_v12  ;;  %v1801_v12 = vld [vmem:[#allocation2 + $0x1a8] sm:$0xff] }
 0x382   : > { %v1135_v19 = vsel %vm1133_vm5, %v1132_v18, %v2930_v15  ;;  %v1134_v20 = vsel %vm1133_vm5, %v1131_v17, %v2929_v16  ;;  %v1143_v15 = vld [vmem:[#allocation2 + $0x38] sm:$0xff]  ;;  %v1144_v17 = vld [vmem:[#allocation2 + $0x40] sm:$0xff] }
 0x383   : > { %v2936_v21 = vpack.i.bf16 %v1135_v19, %v1134_v20  ;;  %v2719_v22 = vpack.c.bf16 %v1135_v19, %v1134_v20  ;;  %v1803_v16 = vld [vmem:[#allocation2 + $0x1b8] sm:$0xff]  ;;  %v1804_v18 = vld [vmem:[#allocation2 + $0x1c0] sm:$0xff]  ;;  %v1145_v19 = vld [vmem:[#allocation2 + $0x48] sm:$0xff] }
 0x384   : > { %v1805_v20 = vld [vmem:[#allocation2 + $0x1c8] sm:$0xff] }
 0x385   : > { %2937 = vrot.lane.b32.xlu0 %v2936_v21, %s3049_s8  ;;  %2932 = vrot.lane.b32.xlu1 %v2936_v21, %s3047_s12 }
 0x389   : > { %2942 = vrot.lane.b32.xlu1 %v2936_v21, %s3054_s10  ;;  %v1146_v21 = vld [vmem:[#allocation2 + $0x50] sm:$0xff] }
 0x3f7   : > { %v2938_v23 = vpop.permute.xlu0 %2937  ;;  %v2933_v24 = vpop.permute.xlu1 %2932 }
 0x3f8   : > { %v2940_v25 = vunpack.i.h.bf16 %v2938_v23  ;;  %v2939_v26 = vunpack.i.l.bf16 %v2938_v23  ;;  %v2935_v27 = vunpack.i.h.bf16 %v2933_v24  ;;  %v2934_v28 = vunpack.i.l.bf16 %v2933_v24  ;;  %v1147_v23 = vld [vmem:[#allocation2 + $0x58] sm:$0xff] }
 0x3f9   : > { %v1807_v24 = vld [vmem:[#allocation2 + $0x1d8] sm:$0xff] }
 0x3fa   : > { %v2723_v29 = vpack.c.bf16 %v2940_v25, %v2939_v26  ;;  %v2715_v30 = vpack.c.bf16 %v2935_v27, %v2934_v28  ;;  %v1148_v25 = vld [vmem:[#allocation2 + $0x60] sm:$0xff]  ;;  %v1149_v27 = vld [vmem:[#allocation2 + $0x68] sm:$0xff] }
 0x3fb   : > { %v2943_v31 = vpop.permute.xlu1 %2942  ;;  %v1808_v26 = vld [vmem:[#allocation2 + $0x1e0] sm:$0xff]  ;;  %v1809_v28 = vld [vmem:[#allocation2 + $0x1e8] sm:$0xff] }
 0x3fc   : > { %v2945_v32 = vunpack.i.h.bf16 %v2943_v31  ;;  %v2944_v33 = vunpack.i.l.bf16 %v2943_v31  ;;  %2716 = vmatprep.subr.bf16.mxu1 %v2715_v30  ;;  %2724 = vmatprep.subr.bf16.mxu0 %v2723_v29  ;;  %v1151_v31 = vld [vmem:[#allocation2 + $0x78] sm:$0xff] }
 0x3fd   : > { %2718 = vmatpush3.bf16.msra.mxu1 %v2715_v30  ;;  %2726 = vmatpush3.bf16.msra.mxu0 %v2723_v29  ;;  %v1150_v29 = vld [vmem:[#allocation2 + $0x70] sm:$0xff] }
 0x3fe   : > { %v2727_v36 = vpack.c.bf16 %v2945_v32, %v2944_v33  ;;  %2720 = vmatprep.subr.bf16.mxu1 %v2719_v22  ;;  %v1810_v30 = vld [vmem:[#allocation2 + $0x1f0] sm:$0xff]  ;;  %v1811_v32 = vld [vmem:[#allocation2 + $0x1f8] sm:$0xff]  ;;  %v3055_v33 = vmov 0.0|0.0  }
 0x400   : > { %2525 = vmatmul.mubr.msk.f32.vlgmr.msra.gmra.mrb[6].mxu1 %vm445_vm1, %v1154_v34  ;;  %2581 = vmatmul.mubr.msk.f32.vlgmr.msra.gmra.mrb[4].mxu0 %vm445_vm1, %v1565_v35  ;;  %v3057_v34 = vmov 0.0  }
 0x401   : > { %2728 = vmatprep.subr.bf16.mxu0 %v2727_v36  ;;  %2722 = vmatpush3.bf16.msra.mxu1 %v2719_v22  ;;  %v1806_v22 = vld [vmem:[#allocation2 + $0x1d0] sm:$0xff] }
 0x402   : > { %2730 = vmatpush3.bf16.msra.mxu0 %v2727_v36  ;;  %2527 = vmatprep.mubr.msk.f32.mxu1 %vm445_vm1, %v1155_v37 }
 0x403   : > { %2583 = vmatprep.mubr.msk.f32.mxu0 %vm445_vm1, %v1566_v38  ;;  %2731 = vmatprep.subr.bf16.mxu1 %v3055_v33 }
 0x404   : > { %2528 = vmatmul.mubr.msk.f32.gmra.mrb[8].mxu1 %vm445_vm1, %v1156_v39  ;;  %2584 = vmatmul.mubr.msk.f32.gmra.mrb[6].mxu0 %vm445_vm1, %v1567_v40 }
 0x405   : > { %2530 = vmatprep.mubr.msk.f32.mxu1 %vm445_vm1, %v1157_v41  ;;  %2586 = vmatprep.mubr.msk.f32.mxu0 %vm445_vm1, %v1568_v42 }
 0x408   : > { %2531 = vmatmul.mubr.msk.f32.gmra.mrb[10].mxu1 %vm445_vm1, %v1158_v43  ;;  %2587 = vmatmul.mubr.msk.f32.gmra.mrb[8].mxu0 %vm445_vm1, %v1569_v44 }
 0x409   : > { %2533 = vmatprep.mubr.msk.f32.mxu1 %vm445_vm1, %v1159_v45  ;;  %2589 = vmatprep.mubr.msk.f32.mxu0 %vm445_vm1, %v1570_v46 }
 0x40c   : > { %2534 = vmatmul.mubr.msk.f32.gmra.mrb[12].mxu1 %vm445_vm1, %v1160_v47  ;;  %2590 = vmatmul.mubr.msk.f32.gmra.mrb[10].mxu0 %vm445_vm1, %v1571_v48 }
 0x40d   : > { %2536 = vmatprep.mubr.msk.f32.mxu1 %vm445_vm1, %v1161_v49  ;;  %2592 = vmatprep.mubr.msk.f32.mxu0 %vm445_vm1, %v1572_v50 }
 0x410   : > { %2537 = vmatmul.mubr.msk.f32.gmra.mrb[14].mxu1 %vm445_vm1, %v1162_v51  ;;  %2593 = vmatmul.mubr.msk.f32.gmra.mrb[12].mxu0 %vm445_vm1, %v1573_v52 }
 0x411   : > { %2539 = vmatprep.mubr.msk.f32.mxu1 %vm445_vm1, %v1163_v53  ;;  %2595 = vmatprep.mubr.msk.f32.mxu0 %vm445_vm1, %v1574_v54 }
 0x414   : > { %2540 = vmatmul.mubr.msk.f32.gmra.mrb[16].mxu1 %vm445_vm1, %v1164_v55  ;;  %2596 = vmatmul.mubr.msk.f32.gmra.mrb[14].mxu0 %vm445_vm1, %v1575_v56 }
 0x415   : > { %2542 = vmatprep.mubr.msk.f32.mxu1 %vm445_vm1, %v1165_v57  ;;  %2598 = vmatprep.mubr.msk.f32.mxu0 %vm445_vm1, %v1576_v58 }
 0x418   : > { %2543 = vmatmul.mubr.msk.f32.gmra.mrb[18].mxu1 %vm445_vm1, %v1166_v59  ;;  %2599 = vmatmul.mubr.msk.f32.gmra.mrb[16].mxu0 %vm445_vm1, %v1577_v60 }
 0x419   : > { %2545 = vmatprep.mubr.msk.f32.mxu1 %vm445_vm1, %v1167_v61  ;;  %2601 = vmatprep.mubr.msk.f32.mxu0 %vm445_vm1, %v1578_v62 }
 0x41c   : > { %2546 = vmatmul.mubr.msk.f32.gmra.mrb[20].mxu1 %vm445_vm1, %v1168_v63  ;;  %2602 = vmatmul.mubr.msk.f32.gmra.mrb[18].mxu0 %vm445_vm1, %v1579_v0 }
 0x41d   : > { %2552 = vmatprep.mubr.msk.f32.mxu1 %vm445_vm1, %v1136_v1  ;;  %2608 = vmatprep.mubr.msk.f32.mxu0 %vm445_vm1, %v1796_v2 }
 0x420   : > { %2553 = vmatmul.mubr.msk.f32.vlgmr.msra.gmra.mrb[6].mxu1 %vm445_vm1, %v1137_v3  ;;  %2609 = vmatmul.mubr.msk.f32.vlgmr.msra.gmra.mrb[4].mxu0 %vm445_vm1, %v1797_v4 }
 0x421   : > { %2555 = vmatprep.mubr.msk.f32.mxu1 %vm445_vm1, %v1138_v5  ;;  %2611 = vmatprep.mubr.msk.f32.mxu0 %vm445_vm1, %v1798_v6 }
 0x424   : > { %2556 = vmatmul.mubr.msk.f32.gmra.mrb[8].mxu1 %vm445_vm1, %v1139_v7  ;;  %2612 = vmatmul.mubr.msk.f32.gmra.mrb[6].mxu0 %vm445_vm1, %v1799_v8 }
 0x425   : > { %2558 = vmatprep.mubr.msk.f32.mxu1 %vm445_vm1, %v1140_v9  ;;  %2614 = vmatprep.mubr.msk.f32.mxu0 %vm445_vm1, %v1800_v10 }
 0x428   : > { %2559 = vmatmul.mubr.msk.f32.gmra.mrb[10].mxu1 %vm445_vm1, %v1141_v11  ;;  %2615 = vmatmul.mubr.msk.f32.gmra.mrb[8].mxu0 %vm445_vm1, %v1801_v12 }
 0x429   : > { %2561 = vmatprep.mubr.msk.f32.mxu1 %vm445_vm1, %v1142_v13  ;;  %2617 = vmatprep.mubr.msk.f32.mxu0 %vm445_vm1, %v1802_v14 }
 0x42c   : > { %2562 = vmatmul.mubr.msk.f32.gmra.mrb[12].mxu1 %vm445_vm1, %v1143_v15  ;;  %2618 = vmatmul.mubr.msk.f32.gmra.mrb[10].mxu0 %vm445_vm1, %v1803_v16 }
 0x42d   : > { %2564 = vmatprep.mubr.msk.f32.mxu1 %vm445_vm1, %v1144_v17  ;;  %2620 = vmatprep.mubr.msk.f32.mxu0 %vm445_vm1, %v1804_v18 }
 0x430   : > { %2565 = vmatmul.mubr.msk.f32.gmra.mrb[14].mxu1 %vm445_vm1, %v1145_v19  ;;  %2621 = vmatmul.mubr.msk.f32.gmra.mrb[12].mxu0 %vm445_vm1, %v1805_v20 }
 0x431   : > { %2567 = vmatprep.mubr.msk.f32.mxu1 %vm445_vm1, %v1146_v21  ;;  %2623 = vmatprep.mubr.msk.f32.mxu0 %vm445_vm1, %v1806_v22 }
 0x434   : > { %2568 = vmatmul.mubr.msk.f32.gmra.mrb[16].mxu1 %vm445_vm1, %v1147_v23  ;;  %2624 = vmatmul.mubr.msk.f32.gmra.mrb[14].mxu0 %vm445_vm1, %v1807_v24 }
 0x435   : > { %2570 = vmatprep.mubr.msk.f32.mxu1 %vm445_vm1, %v1148_v25  ;;  %2626 = vmatprep.mubr.msk.f32.mxu0 %vm445_vm1, %v1808_v26 }
 0x438   : > { %2571 = vmatmul.mubr.msk.f32.gmra.mrb[18].mxu1 %vm445_vm1, %v1149_v27  ;;  %2627 = vmatmul.mubr.msk.f32.gmra.mrb[16].mxu0 %vm445_vm1, %v1809_v28 }
 0x439   : > { %2573 = vmatprep.mubr.msk.f32.mxu1 %vm445_vm1, %v1150_v29  ;;  %2629 = vmatprep.mubr.msk.f32.mxu0 %vm445_vm1, %v1810_v30 }
 0x43c   : > { %2574 = vmatmul.mubr.msk.f32.gmra.mrb[20].mxu1 %vm445_vm1, %v1151_v31  ;;  %2630 = vmatmul.mubr.msk.f32.gmra.mrb[18].mxu0 %vm445_vm1, %v1811_v32 }
 0x43d   : > { %2664 = vmatprep.mubr.msk.f32.mxu1 %vm3056_vm6, %v3057_v34 }
 0x4f3   : > { %v2554_v35 = vpop.f32.mrb[6].mxu1  ;;  %v2610_v36 = vpop.f32.mrb[4].mxu0 }
 0x4f4   : > { %v2755_v37 = vadd.f32 %v2610_v36, %v2554_v35  ;;  %v1484_v38 = vpop.f32.mrb[7].mxu1  ;;  %v1932_v39 = vpop.f32.mrb[5].mxu0 }
 0x4f5   : > { %v2756_v40 = vadd.f32 %v1932_v39, %v1484_v38 }
 0x4f6   : > { %v2028_v41 = vmul.f32 %v2755_v37, %v2755_v37 }
 0x4f7   : > { %v2027_v42 = vmul.f32 %v2756_v40, %v2756_v40  ;;  %v2557_v43 = vpop.f32.mrb[8].mxu1  ;;  %v2613_v44 = vpop.f32.mrb[6].mxu0 }
 0x4f8   : > { %v2757_v45 = vadd.f32 %v2613_v44, %v2557_v43  ;;  %v1494_v46 = vpop.f32.mrb[9].mxu1  ;;  %v1942_v47 = vpop.f32.mrb[7].mxu0  ;;  %v2043_v44 = vld [vmem:[%s3373_s4] sm:$0xff] }
 0x4f9   : > { %v2732_v48 = vpack.c.bf16 %v2028_v41, %v2027_v42  ;;  %v2758_v49 = vadd.f32 %v1942_v47, %v1494_v46 }
 0x4fa   : > { %v2030_v50 = vmul.f32 %v2757_v45, %v2757_v45 }
 0x4fb   : > { %v2029_v51 = vmul.f32 %v2758_v49, %v2758_v49  ;;  %v2560_v52 = vpop.f32.mrb[10].mxu1  ;;  %v2616_v53 = vpop.f32.mrb[8].mxu0  ;;  %2733 = vmatpush3.bf16.msra.mxu1 %v2732_v48 }
 0x4fc   : > { %v2759_v54 = vadd.f32 %v2616_v53, %v2560_v52  ;;  %v1504_v55 = vpop.f32.mrb[11].mxu1  ;;  %v1952_v56 = vpop.f32.mrb[9].mxu0  ;;  %2734 = vmatprep.subr.bf16.mxu1 %v3055_v33 }
 0x4fd   : > { %v2735_v57 = vpack.c.bf16 %v2030_v50, %v2029_v51  ;;  %v2760_v58 = vadd.f32 %v1952_v56, %v1504_v55 }
 0x4fe   : > { %v2032_v59 = vmul.f32 %v2759_v54, %v2759_v54 }
 0x4ff   : > { %v2031_v60 = vmul.f32 %v2760_v58, %v2760_v58  ;;  %v2563_v61 = vpop.f32.mrb[12].mxu1  ;;  %v2619_v62 = vpop.f32.mrb[10].mxu0  ;;  %2736 = vmatpush3.bf16.msra.mxu1 %v2735_v57 }
 0x500   : > { %v2761_v63 = vadd.f32 %v2619_v62, %v2563_v61  ;;  %v1514_v0 = vpop.f32.mrb[13].mxu1  ;;  %v1962_v1 = vpop.f32.mrb[11].mxu0  ;;  %2737 = vmatprep.subr.bf16.mxu1 %v3055_v33 }
 0x501   : > { %v2738_v2 = vpack.c.bf16 %v2032_v59, %v2031_v60  ;;  %v2762_v3 = vadd.f32 %v1962_v1, %v1514_v0 }
 0x502   : > { %v2034_v4 = vmul.f32 %v2761_v63, %v2761_v63 }
 0x503   : > { %v2033_v5 = vmul.f32 %v2762_v3, %v2762_v3  ;;  %v2566_v6 = vpop.f32.mrb[14].mxu1  ;;  %v2622_v7 = vpop.f32.mrb[12].mxu0  ;;  %2739 = vmatpush3.bf16.msra.mxu1 %v2738_v2 }
 0x504   : > { %v2763_v8 = vadd.f32 %v2622_v7, %v2566_v6  ;;  %v1524_v9 = vpop.f32.mrb[15].mxu1  ;;  %v1972_v10 = vpop.f32.mrb[13].mxu0  ;;  %2740 = vmatprep.subr.bf16.mxu1 %v3055_v33 }
 0x505   : > { %v2741_v11 = vpack.c.bf16 %v2034_v4, %v2033_v5  ;;  %v2764_v12 = vadd.f32 %v1972_v10, %v1524_v9 }
 0x506   : > { %v2036_v13 = vmul.f32 %v2763_v8, %v2763_v8 }
 0x507   : > { %v2035_v14 = vmul.f32 %v2764_v12, %v2764_v12  ;;  %v2569_v15 = vpop.f32.mrb[16].mxu1  ;;  %v2625_v16 = vpop.f32.mrb[14].mxu0  ;;  %2742 = vmatpush3.bf16.msra.mxu1 %v2741_v11 }
 0x508   : > { %v2765_v17 = vadd.f32 %v2625_v16, %v2569_v15  ;;  %v1534_v18 = vpop.f32.mrb[17].mxu1  ;;  %v1982_v19 = vpop.f32.mrb[15].mxu0  ;;  %2743 = vmatprep.subr.bf16.mxu1 %v3055_v33 }
 0x509   : > { %v2744_v20 = vpack.c.bf16 %v2036_v13, %v2035_v14  ;;  %v2766_v21 = vadd.f32 %v1982_v19, %v1534_v18 }
 0x50a   : > { %v2038_v22 = vmul.f32 %v2765_v17, %v2765_v17 }
 0x50b   : > { %v2037_v23 = vmul.f32 %v2766_v21, %v2766_v21  ;;  %v2572_v24 = vpop.f32.mrb[18].mxu1  ;;  %v2628_v25 = vpop.f32.mrb[16].mxu0  ;;  %2745 = vmatpush3.bf16.msra.mxu1 %v2744_v20 }
 0x50c   : > { %v2767_v26 = vadd.f32 %v2628_v25, %v2572_v24  ;;  %v1544_v27 = vpop.f32.mrb[19].mxu1  ;;  %v1992_v28 = vpop.f32.mrb[17].mxu0  ;;  %2746 = vmatprep.subr.bf16.mxu1 %v3055_v33 }
 0x50d   : > { %v2747_v29 = vpack.c.bf16 %v2038_v22, %v2037_v23  ;;  %v2768_v30 = vadd.f32 %v1992_v28, %v1544_v27 }
 0x50e   : > { %v2040_v31 = vmul.f32 %v2767_v26, %v2767_v26 }
 0x50f   : > { %v2039_v32 = vmul.f32 %v2768_v30, %v2768_v30  ;;  %v2575_v34 = vpop.f32.mrb[20].mxu1  ;;  %v2631_v35 = vpop.f32.mrb[18].mxu0  ;;  %2748 = vmatpush3.bf16.msra.mxu1 %v2747_v29 }
 0x510   : > { %v2769_v36 = vadd.f32 %v2631_v35, %v2575_v34  ;;  %v1554_v37 = vpop.f32.mrb[21].mxu1  ;;  %v2002_v38 = vpop.f32.mrb[19].mxu0  ;;  %2749 = vmatprep.subr.bf16.mxu1 %v3055_v33 }
 0x511   : > { %v2750_v39 = vpack.c.bf16 %v2040_v31, %v2039_v32  ;;  %v2770_v40 = vadd.f32 %v2002_v38, %v1554_v37 }
 0x512   : > { %v2042_v41 = vmul.f32 %v2769_v36, %v2769_v36 }
 0x513   : > { %v2041_v42 = vmul.f32 %v2770_v40, %v2770_v40  ;;  %2751 = vmatpush3.bf16.msra.mxu1 %v2750_v39 }
 0x514   : > { %2752 = vmatprep.subr.bf16.mxu1 %v3055_v33 }
 0x515   : > { %v2753_v43 = vpack.c.bf16 %v2042_v41, %v2041_v42 }
 0x517   : > { %2754 = vmatpush3.bf16.msra.mxu1 %v2753_v43 }
 0x51a   : > { %2665 = vmatmul.mubr.f32.vlgmr.msra.gmra.mrb[22].mxu1 %v2043_v44 }
 0x5ed   : > { %v2110_v45 = vpop.f32.mrb[22].mxu1 }
 0x5ee   : > { %v2111_v46 = vadd.f32 1e-05, %v2110_v45  ;;  %v2666_v47 = vpop.f32.mrb[23].mxu1 }
 0x5f0   : > { %2946 = vlog2.f32 %v2111_v46 }
 0x5fa   : > { %v2947_v48 = vpop.eup %2946 }
 0x5fb   : > { %v2115_v33 = vmul.f32 0.6931472, %v2947_v48 }
 0x5fd   : > { %2117 = vst.msk [vmem:[%s232_s16] sm:$0xff] %vm2116_vm7, %v2115_v33 }
 0x5fe   : > { %2989 = shalt.err (!%p2986_p7)
}
 0x5ff   : > { %s2990_s13 = scalar_lea.hbm %s3327_s26, 128  ;;  %s2994_s8 = scalar_lea.hbm %s3374_s5, 256 }
 0x600   : > { %p2991_p8 = scmp.ne.s32.totalorder %s3327_s26, %s2990_s13  ;;  %p2995_p1 = scmp.lt.u32.totalorder %s3327_s26, %s3374_s5 }
 0x601   : > { %p2996_p0 = scmp.lt.u32.totalorder %s2994_s8, %s2990_s13  ;;  %p2998_p6 = scmp.lt.u32.totalorder %s2990_s13, %s3327_s26 }
 0x602   : > { %p2992_p11 = pnand %p2991_p8, %p3385_p9 }
 0x603   : > { %p2997_p5 = por %p2996_p0, %p2995_p1 }
 0x604   : > { %p2993_p13 = pneg %p2992_p11 }
 0x605   : > { %p2999_p10 = por %p2998_p6, %p2997_p5 }
 0x607   : > { %p3000_p12 = pnand %p2999_p10, %p2993_p13 }
 0x609   : > { %3003 = shalt.err (!%p3000_p12)
}
 0x60a   : > { %2817 = dma.vmem_to_hbm [thread:$0]  (%p3385_p9), %s3329_s17, 128, %s3327_s26, %s2119_s6  }
 0x60b PF: > { %p2829_p2 = scmp.ge.s32.totalorder %s3042_s21, 2  ;;  %s2144_s15 = sand.u32 1, %s3030_s18  }
 0x60c   : > { %p3386_p3 = scmp.ne.s32.totalorder %s3379_s29, 0  ;;  %s2145_s16 = scalar_lea.sflag [#allocation4], %s2144_s15 }
 0x60e   : > { %p2824_p4 = pnand %p2829_p2, %p3386_p3 }
 0x610   : > { %3025 = dma.done.wait (!%p2824_p4), %s2145_s16, 128  }
 0x611   : > { %3027 = vsyncadd (!%p2824_p4), %s2145_s16, 4294967168  ;;  %p16_p7 = scmp.ge.s32.totalorder %s3114_s24, 4   ;;  %s3387_s18 = smov %s3034_s19 }
 0x612   : > { %s3388_s19 = smov %s3038_s20  ;;  %s3389_s20 = smov %s3125_s27 }
 0x613   : > { %s3390_s21 = smov %s3114_s24  ;;  %18 = sbr.rel (!%p16_p7) target bundleno = 4 (0x4), region = 87 }
 0x61a   :  { %2150 = vsyncpa [#allocation3], 1 }
 0x61b   :  { %2152 = vsyncpa [#allocation3 + $0x1], 1 }
 0x61c   :  { %2153 = vsyncpa [#allocation4], 1 }
 0x61d   :  { %2155 = vsyncpa [#allocation4 + $0x1], 1 }

</bundles_post_ra>
